<compile_context>
chip_gen: v7x
topology: tpu7x:2x2x1
jax: 0.10.0
libtpu: 0.0.40
codegen_flags: <defaults>
</compile_context>

<pallas_src>
import functools

import jax
import jax.numpy as jnp
from jax.experimental import pallas as pl
from jax.experimental.pallas import tpu as pltpu

_LANES = 128
_SUBLANES = 8
_MAX_BLOCK_ROWS = 512  # (512, 128) f32 block = 256 KiB per input per step


def _dice_kernel(logit_ref, target_ref, out_ref, acc_pt, acc_p, acc_t, *, eps):
    i = pl.program_id(0)

    @pl.when(i == 0)
    def _():
        acc_pt[...] = jnp.zeros_like(acc_pt)
        acc_p[...] = jnp.zeros_like(acc_p)
        acc_t[...] = jnp.zeros_like(acc_t)

    x = logit_ref[...]                      # (TM, 128) f32, lane-dense
    t = target_ref[...]
    p = 1.0 / (1.0 + jnp.exp(-x))           # sigmoid: exp on EUP, rest on VPU

    tm = x.shape[0]
    n_groups = tm // _SUBLANES
    # Fold rows into (8, 128) vreg-shaped partial sums: summing over the
    # leading (non-tiled) axis is pure vreg-wise VPU adds — the expensive
    # cross-lane/sublane reduce is deferred to the final step.
    acc_pt[...] += jnp.sum((p * t).reshape(n_groups, _SUBLANES, _LANES), axis=0)
    acc_p[...] += jnp.sum(p.reshape(n_groups, _SUBLANES, _LANES), axis=0)
    acc_t[...] += jnp.sum(t.reshape(n_groups, _SUBLANES, _LANES), axis=0)

    @pl.when(i == pl.num_programs(0) - 1)
    def _():
        s_pt = jnp.sum(acc_pt[...])         # one XLU reduce each, done once
        s_p = jnp.sum(acc_p[...])
        s_t = jnp.sum(acc_t[...])
        out_ref[0, 0] = jnp.float32(1.0) - (2.0 * s_pt + jnp.float32(eps)) / (s_p + s_t)


def dice_loss(logits, targets, eps: float = 1e-9):
    """Forward pass of DiceLoss: 1 - (2*sum(sigmoid(l)*t) + eps) / (sum(sigmoid(l)) + sum(t))."""
    assert logits.shape == targets.shape
    flat_l = logits.reshape(-1).astype(jnp.float32)
    flat_t = targets.reshape(-1).astype(jnp.float32)
    n = flat_l.shape[0]

    # Rows of 128 lanes, rounded up to a multiple of 8 sublanes.
    rows = -(-n // (_LANES * _SUBLANES)) * _SUBLANES
    if rows <= _MAX_BLOCK_ROWS:
        tm = rows                            # single grid step (common case)
    else:
        tm = _MAX_BLOCK_ROWS                 # row-tiled grid for big inputs
        rows = -(-rows // tm) * tm

    padded = rows * _LANES
    pad = padded - n
    if pad:
        # sigmoid(-1e30) == 0 and target 0 -> padding contributes 0 to all sums.
        flat_l = jnp.concatenate(
            [flat_l, jnp.full((pad,), -1e30, dtype=jnp.float32)])
        flat_t = jnp.concatenate(
            [flat_t, jnp.zeros((pad,), dtype=jnp.float32)])

    l2d = flat_l.reshape(rows, _LANES)
    t2d = flat_t.reshape(rows, _LANES)
    grid = (rows // tm,)

    kernel = functools.partial(_dice_kernel, eps=float(eps))
    out = pl.pallas_call(
        kernel,
        out_shape=jax.ShapeDtypeStruct((1, 1), jnp.float32),
        grid=grid,
        in_specs=[
            pl.BlockSpec((tm, _LANES), lambda i: (i, 0)),   # logits slab
            pl.BlockSpec((tm, _LANES), lambda i: (i, 0)),   # targets slab
        ],
        out_specs=pl.BlockSpec(memory_space=pltpu.MemorySpace.SMEM),
        scratch_shapes=[
            pltpu.VMEM((_SUBLANES, _LANES), jnp.float32),   # sum(p*t) partials
            pltpu.VMEM((_SUBLANES, _LANES), jnp.float32),   # sum(p)   partials
            pltpu.VMEM((_SUBLANES, _LANES), jnp.float32),   # sum(t)   partials
        ],
        # Accumulator is resident across the (usually length-1) grid axis.
        compiler_params=pltpu.CompilerParams(
            dimension_semantics=("arbitrary",)),
    )(l2d, t2d)
    return out[0, 0]


def _reference_loss(logits, targets, eps: float = 1e-9):
    """Pure-JAX transcription of the PyTorch DiceLoss.forward (for verification)."""
    num = logits.shape[0]
    p = jax.nn.sigmoid(logits.astype(jnp.float32)).reshape(num, -1)
    t = targets.astype(jnp.float32).reshape(num, -1)
    intersection = 2.0 * jnp.sum(p * t)
    union = jnp.sum(p) + jnp.sum(t)
    return 1.0 - (intersection + eps) / union


if __name__ == "__main__":
    B, C, H, W = 2, 4, 16, 16
    eps = 1e-9

    key = jax.random.PRNGKey(0)
    k1, k2 = jax.random.split(key)
    logits = jax.random.normal(k1, (B, C, H, W), dtype=jnp.float32)
    targets = (jax.random.uniform(k2, (B, C, H, W)) > 0.5).astype(jnp.float32)

    loss = dice_loss(logits, targets, eps=eps)
    loss = jax.block_until_ready(loss)

    ref = _reference_loss(logits, targets, eps=eps)
    assert jnp.allclose(loss, ref, rtol=1e-5, atol=1e-6), (loss, ref)
    print("KERNEL_OK")
</pallas_src>

<mosaic_0001>
module attributes {stable_mosaic.version = 11 : i64} {
  func.func @_dice_kernel(%arg0: i32, %arg1: memref<16x128xf32, #tpu.memory_space<vmem>>, %arg2: memref<16x128xf32, #tpu.memory_space<vmem>>, %arg3: memref<1x1xf32, #tpu.memory_space<smem>>, %arg4: memref<8x128xf32, #tpu.memory_space<vmem>>, %arg5: memref<8x128xf32, #tpu.memory_space<vmem>>, %arg6: memref<8x128xf32, #tpu.memory_space<vmem>>) attributes {dimension_semantics = [#tpu.dimension_semantics<arbitrary>], iteration_bounds = array<i64: 1>, scalar_prefetch = 0 : i64, scratch_operands = 3 : i64, tpu.core_type = #tpu.core_type<tc>, window_params = [{transform_indices = @transform_0, window_bounds = array<i64: 16, 128>}, {transform_indices = @transform_1, window_bounds = array<i64: 16, 128>}, {transform_indices = @transform_2, window_bounds = array<i64: 1, 1>}]} {
    %c0_i32 = arith.constant 0 : i32
    %0 = arith.cmpi eq, %arg0, %c0_i32 : i32
    %1 = arith.extui %0 : i1 to i32
    %c0_i32_0 = arith.constant 0 : i32
    %2 = arith.cmpi ne, %1, %c0_i32_0 : i32
    scf.if %2 {
      %cst_23 = arith.constant 0.000000e+00 : f32
      %31 = vector.broadcast %cst_23 : f32 to vector<8x128xf32>
      %c0_24 = arith.constant 0 : index
      %c0_25 = arith.constant 0 : index
      %32 = vector.load %arg4[%c0_24, %c0_25] : memref<8x128xf32, #tpu.memory_space<vmem>>, vector<8x128xf32>
      tpu.vector_store %arg4[%c0_24, %c0_25], %31 {strides = array<i32>} : memref<8x128xf32, #tpu.memory_space<vmem>>, vector<8x128xf32>,
      %cst_26 = arith.constant 0.000000e+00 : f32
      %33 = vector.broadcast %cst_26 : f32 to vector<8x128xf32>
      %c0_27 = arith.constant 0 : index
      %c0_28 = arith.constant 0 : index
      %34 = vector.load %arg5[%c0_27, %c0_28] : memref<8x128xf32, #tpu.memory_space<vmem>>, vector<8x128xf32>
      tpu.vector_store %arg5[%c0_27, %c0_28], %33 {strides = array<i32>} : memref<8x128xf32, #tpu.memory_space<vmem>>, vector<8x128xf32>,
      %cst_29 = arith.constant 0.000000e+00 : f32
      %35 = vector.broadcast %cst_29 : f32 to vector<8x128xf32>
      %c0_30 = arith.constant 0 : index
      %c0_31 = arith.constant 0 : index
      %36 = vector.load %arg6[%c0_30, %c0_31] : memref<8x128xf32, #tpu.memory_space<vmem>>, vector<8x128xf32>
      tpu.vector_store %arg6[%c0_30, %c0_31], %35 {strides = array<i32>} : memref<8x128xf32, #tpu.memory_space<vmem>>, vector<8x128xf32>,
    } else {
    }
    %c0 = arith.constant 0 : index
    %c0_1 = arith.constant 0 : index
    %3 = vector.load %arg1[%c0, %c0_1] : memref<16x128xf32, #tpu.memory_space<vmem>>, vector<16x128xf32>
    %c0_2 = arith.constant 0 : index
    %c0_3 = arith.constant 0 : index
    %4 = vector.load %arg2[%c0_2, %c0_3] : memref<16x128xf32, #tpu.memory_space<vmem>>, vector<16x128xf32>
    %cst = arith.constant 0.000000e+00 : f32
    %5 = vector.broadcast %cst : f32 to vector<16x128xf32>
    %6 = arith.subf %5, %3 : vector<16x128xf32>
    %7 = math.exp %6 : vector<16x128xf32>
    %cst_4 = arith.constant 1.000000e+00 : f32
    %8 = vector.broadcast %cst_4 : f32 to vector<16x128xf32>
    %9 = arith.addf %8, %7 : vector<16x128xf32>
    %cst_5 = arith.constant 1.000000e+00 : f32
    %10 = vector.broadcast %cst_5 : f32 to vector<16x128xf32>
    %11 = arith.divf %10, %9 : vector<16x128xf32>
    %c0_6 = arith.constant 0 : index
    %c0_7 = arith.constant 0 : index
    %12 = vector.load %arg4[%c0_6, %c0_7] : memref<8x128xf32, #tpu.memory_space<vmem>>, vector<8x128xf32>
    %13 = arith.mulf %11, %4 : vector<16x128xf32>
    %14 = vector.shape_cast %13 : vector<16x128xf32> to vector<2x8x128xf32>
    %cst_8 = arith.constant dense<0.000000e+00> : vector<8x128xf32>
    %15 = vector.multi_reduction <add>, %14, %cst_8 [0] : vector<2x8x128xf32> to vector<8x128xf32>
    %16 = arith.addf %12, %15 : vector<8x128xf32>
    %c0_9 = arith.constant 0 : index
    %c0_10 = arith.constant 0 : index
    %17 = vector.load %arg4[%c0_9, %c0_10] : memref<8x128xf32, #tpu.memory_space<vmem>>, vector<8x128xf32>
    tpu.vector_store %arg4[%c0_9, %c0_10], %16 {strides = array<i32>} : memref<8x128xf32, #tpu.memory_space<vmem>>, vector<8x128xf32>,
    %c0_11 = arith.constant 0 : index
    %c0_12 = arith.constant 0 : index
    %18 = vector.load %arg5[%c0_11, %c0_12] : memref<8x128xf32, #tpu.memory_space<vmem>>, vector<8x128xf32>
    %19 = vector.shape_cast %11 : vector<16x128xf32> to vector<2x8x128xf32>
    %cst_13 = arith.constant dense<0.000000e+00> : vector<8x128xf32>
    %20 = vector.multi_reduction <add>, %19, %cst_13 [0] : vector<2x8x128xf32> to vector<8x128xf32>
    %21 = arith.addf %18, %20 : vector<8x128xf32>
    %c0_14 = arith.constant 0 : index
    %c0_15 = arith.constant 0 : index
    %22 = vector.load %arg5[%c0_14, %c0_15] : memref<8x128xf32, #tpu.memory_space<vmem>>, vector<8x128xf32>
    tpu.vector_store %arg5[%c0_14, %c0_15], %21 {strides = array<i32>} : memref<8x128xf32, #tpu.memory_space<vmem>>, vector<8x128xf32>,
    %c0_16 = arith.constant 0 : index
    %c0_17 = arith.constant 0 : index
    %23 = vector.load %arg6[%c0_16, %c0_17] : memref<8x128xf32, #tpu.memory_space<vmem>>, vector<8x128xf32>
    %24 = vector.shape_cast %4 : vector<16x128xf32> to vector<2x8x128xf32>
    %cst_18 = arith.constant dense<0.000000e+00> : vector<8x128xf32>
    %25 = vector.multi_reduction <add>, %24, %cst_18 [0] : vector<2x8x128xf32> to vector<8x128xf32>
    %26 = arith.addf %23, %25 : vector<8x128xf32>
    %c0_19 = arith.constant 0 : index
    %c0_20 = arith.constant 0 : index
    %27 = vector.load %arg6[%c0_19, %c0_20] : memref<8x128xf32, #tpu.memory_space<vmem>>, vector<8x128xf32>
    tpu.vector_store %arg6[%c0_19, %c0_20], %26 {strides = array<i32>} : memref<8x128xf32, #tpu.memory_space<vmem>>, vector<8x128xf32>,
    %c0_i32_21 = arith.constant 0 : i32
    %28 = arith.cmpi eq, %arg0, %c0_i32_21 : i32
    %29 = arith.extui %28 : i1 to i32
    %c0_i32_22 = arith.constant 0 : i32
    %30 = arith.cmpi ne, %29, %c0_i32_22 : i32
    scf.if %30 {
      %c0_23 = arith.constant 0 : index
      %c0_24 = arith.constant 0 : index
      %31 = vector.load %arg4[%c0_23, %c0_24] : memref<8x128xf32, #tpu.memory_space<vmem>>, vector<8x128xf32>
      %32 = vector.shape_cast %31 : vector<8x128xf32> to vector<1x8x128xf32>
      %cst_25 = arith.constant dense<0.000000e+00> : vector<1xf32>
      %33 = vector.multi_reduction <add>, %32, %cst_25 [1, 2] : vector<1x8x128xf32> to vector<1xf32>
      %34 = vector.shape_cast %33 : vector<1xf32> to vector<1x1x1xf32>
      %35 = vector.extract %34[0, 0, 0] : f32 from vector<1x1x1xf32>
      %c0_26 = arith.constant 0 : index
      %c0_27 = arith.constant 0 : index
      %36 = vector.load %arg5[%c0_26, %c0_27] : memref<8x128xf32, #tpu.memory_space<vmem>>, vector<8x128xf32>
      %37 = vector.shape_cast %36 : vector<8x128xf32> to vector<1x8x128xf32>
      %cst_28 = arith.constant dense<0.000000e+00> : vector<1xf32>
      %38 = vector.multi_reduction <add>, %37, %cst_28 [1, 2] : vector<1x8x128xf32> to vector<1xf32>
      %39 = vector.shape_cast %38 : vector<1xf32> to vector<1x1x1xf32>
      %40 = vector.extract %39[0, 0, 0] : f32 from vector<1x1x1xf32>
      %c0_29 = arith.constant 0 : index
      %c0_30 = arith.constant 0 : index
      %41 = vector.load %arg6[%c0_29, %c0_30] : memref<8x128xf32, #tpu.memory_space<vmem>>, vector<8x128xf32>
      %42 = vector.shape_cast %41 : vector<8x128xf32> to vector<1x8x128xf32>
      %cst_31 = arith.constant dense<0.000000e+00> : vector<1xf32>
      %43 = vector.multi_reduction <add>, %42, %cst_31 [1, 2] : vector<1x8x128xf32> to vector<1xf32>
      %44 = vector.shape_cast %43 : vector<1xf32> to vector<1x1x1xf32>
      %45 = vector.extract %44[0, 0, 0] : f32 from vector<1x1x1xf32>
      %cst_32 = arith.constant 2.000000e+00 : f32
      %46 = arith.mulf %cst_32, %35 : f32
      %cst_33 = arith.constant 9.99999971E-10 : f32
      %47 = arith.addf %46, %cst_33 : f32
      %48 = arith.addf %40, %45 : f32
      %49 = arith.divf %47, %48 : f32
      %cst_34 = arith.constant 1.000000e+00 : f32
      %50 = arith.subf %cst_34, %49 : f32
      %c0_35 = arith.constant 0 : index
      %c0_36 = arith.constant 0 : index
      %51 = memref.load %arg3[%c0_35, %c0_36] : memref<1x1xf32, #tpu.memory_space<smem>>
      memref.store %50, %arg3[%c0_35, %c0_36] : memref<1x1xf32, #tpu.memory_space<smem>>
    } else {
    }
    return
  }
  func.func @transform_0(%arg0: i32) -> (i32, i32) {
    %c0_i32 = arith.constant 0 : i32
    %c0_i32_0 = arith.constant 0 : i32
    return %arg0, %c0_i32 : i32, i32
  }
  func.func @transform_1(%arg0: i32) -> (i32, i32) {
    %c0_i32 = arith.constant 0 : i32
    %c0_i32_0 = arith.constant 0 : i32
    return %arg0, %c0_i32 : i32, i32
  }
  func.func @transform_2(%arg0: i32) -> (i32, i32) {
    %c0_i32 = arith.constant 0 : i32
    %c0_i32_0 = arith.constant 0 : i32
    %c0_i32_1 = arith.constant 0 : i32
    return %c0_i32, %c0_i32_0 : i32, i32
  }
}

</mosaic_0001>

<bundles_post_ra>
// kernel: tpu_custom_call.1
= control target key start
LH: loop header
LB: loop body
LE: loop exit
PB: predicated region body
PF: predicated region fallthrough
CT: control target
= control target key end

     0   :  { %7 = vsyncpa [#allocation6], 0  ;;  %s274_s0 = inlined_call_operand.hbm [shape: f32[16,128], index: 0, kind: input, shape index: {}]   ;;  %s275_s1 = inlined_call_operand.hbm [shape: f32[16,128], index: 1, kind: input, shape index: {}]   ;;  %s276_s2 = inlined_call_operand.hbm [shape: f32[1,1], index: 2, kind: output, shape index: {}]  }
   0x1   :  { %8 = vsyncpa [#allocation9], 0 }
   0x2   :  { %9 = vsyncpa [#allocation7], 0  ;;  %s218_s9 = smov [#allocation5]   ;;  %s158_s13 = scalar_lea.hbm %s274_s0, 256 }
   0x3   :  { %s15_s10 = sshll.u32 %s218_s9, 4  ;;  %p159_p0 = scmp.ne.s32.totalorder %s274_s0, %s158_s13  ;;  %s16_s10 = int_to_ptr.vmem [resolvable:$true] %s15_s10 }
   0x4   :  { %p162_p1 = scmp.lt.u32.totalorder %s158_s13, %s274_s0 }
   0x6   :  { %p164_p2 = pnand %p162_p1, %p159_p0 }
   0x8   :  { %167 = shalt.err (!%p164_p2)
}
   0x9   :  { %s168_s18 = scalar_lea.vmem %s16_s10, 256  ;;  %p173_p4 = scmp.lt.s32.totalorder %s16_s10, %s16_s10 }
   0xa   :  { %p169_p3 = scmp.ne.s32.totalorder %s16_s10, %s168_s18  ;;  %p174_p5 = scmp.lt.s32.totalorder %s168_s18, %s168_s18 }
   0xc   :  { %p175_p6 = por %p174_p5, %p173_p4 }
   0xe   :  { %p176_p7 = pnand %p175_p6, %p169_p3 }
  0x10   :  { %179 = shalt.err (!%p176_p7)
}
  0x11   :  { %s219_s19 = smov 128   ;;  %s220_s20 = smov 8  }
  0x12   :  { %21 = dma.hbm_to_vmem [thread:$0]  %s274_s0, 256, %s16_s10, [#allocation6], %s219_s19, %s219_s19, %s220_s20  }
  0x13   :  { %s221_s23 = smov [#allocation8]   ;;  %s180_s27 = scalar_lea.hbm %s275_s1, 256 }
  0x14   :  { %s27_s24 = sshll.u32 %s221_s23, 4  ;;  %p181_p8 = scmp.ne.s32.totalorder %s275_s1, %s180_s27  ;;  %s28_s24 = int_to_ptr.vmem [resolvable:$true] %s27_s24 }
  0x15   :  { %p184_p9 = scmp.lt.u32.totalorder %s180_s27, %s275_s1 }
  0x17   :  { %p186_p10 = pnand %p184_p9, %p181_p8 }
  0x19   :  { %189 = shalt.err (!%p186_p10)
}
  0x1a   :  { %s190_s4 = scalar_lea.vmem %s28_s24, 256  ;;  %p195_p12 = scmp.lt.s32.totalorder %s28_s24, %s28_s24 }
  0x1b   :  { %p191_p11 = scmp.ne.s32.totalorder %s28_s24, %s190_s4  ;;  %p196_p13 = scmp.lt.s32.totalorder %s190_s4, %s190_s4 }
  0x1d   :  { %p197_p0 = por %p196_p13, %p195_p12 }
  0x1f   :  { %p198_p1 = pnand %p197_p0, %p191_p11 }
  0x21   :  { %201 = shalt.err (!%p198_p1)
}
  0x22   :  { %33 = dma.hbm_to_vmem [thread:$0]  %s275_s1, 256, %s28_s24, [#allocation9], %s219_s19, %s219_s19, %s220_s20  }
  0x23   :  { %212 = dma.done.wait [#allocation6], 256  }
  0x24   :  { %213 = vsyncadd [#allocation6], 4294967040 }
  0x25   :  { %214 = dma.done.wait [#allocation9], 256  }
  0x26   :  { %215 = vsyncadd [#allocation9], 4294967040  ;;  %v49_v0 = vld [vmem:[#allocation8] sm:$0xff]  ;;  %v50_v1 = vld [vmem:[#allocation8 + $0x8] sm:$0xff]  ;;  %s202_s16 = scalar_lea.hbm %s276_s2, 16 }
  0x27   :  { %v47_v2 = vld [vmem:[#allocation5] sm:$0xff]  ;;  %v74_v3 = vadd.f32 %v50_v1, %v49_v0  ;;  %v48_v4 = vld [vmem:[#allocation5 + $0x8] sm:$0xff]  ;;  %p203_p2 = scmp.ne.s32.totalorder %s276_s2, %s202_s16  ;;  %p206_p3 = scmp.lt.u32.totalorder %s202_s16, %s276_s2 }
  0x28   :  { %v51_v5 = vsub.f32 0.0, %v47_v2  ;;  %v52_v6 = vsub.f32 0.0, %v48_v4 }
  0x29   :  { %101 = vadd.xlane.f32.xlu1 %v74_v3  ;;  %p208_p4 = pnand %p206_p3, %p203_p2 }
  0x2a   :  { %v53_v7 = vmul.f32 1.442695, %v51_v5  ;;  %v55_v8 = vmul.f32 1.442695, %v52_v6 }
  0x2c   :  { %148 = vpow2.f32 %v53_v7 }
  0x2d   :  { %150 = vpow2.f32 %v55_v8 }
  0x36   :  { %v149_v9 = vpop.eup %148 }
  0x37   :  { %v151_v10 = vpop.eup %150  ;;  %v57_v11 = vadd.f32 1.0, %v149_v9 }
  0x38   :  { %v58_v12 = vadd.f32 1.0, %v151_v10 }
  0x39   :  { %152 = vrcp.f32 %v57_v11 }
  0x3a   :  { %154 = vrcp.f32 %v58_v12 }
  0x43   :  { %v153_v13 = vpop.eup %152 }
  0x44   :  { %v155_v14 = vpop.eup %154  ;;  %v64_v15 = vmul.f32 %v153_v13, %v49_v0 }
  0x45   :  { %v65_v16 = vmul.f32 %v155_v14, %v50_v1  ;;  %v70_v18 = vadd.f32 %v155_v14, %v153_v13 }
  0x47   :  { %v66_v17 = vadd.f32 %v65_v16, %v64_v15 }
  0x49   :  { %81 = vadd.xlane.f32.xlu0 %v66_v17 }
  0x4d   :  { %91 = vadd.xlane.f32.xlu0 %v70_v18 }
  0xb6   :  { %v102_v19 = vpop.xlane.xlu1 %101 }
  0xb7   :  { %v103_v20 = vrot.slane %v102_v19, 4 }
  0xb9   :  { %v104_v21 = vadd.f32 %v103_v20, %v102_v19 }
  0xbb   :  { %v105_v25 = vrot.slane %v104_v21, 2 }
  0xbd   :  { %v106_v31 = vadd.f32 %v105_v25, %v104_v21 }
  0xbf   :  { %v107_v36 = vrot.slane %v106_v31, 1 }
  0xc1   :  { %v108_v39 = vadd.f32 %v107_v36, %v106_v31 }
  0xd6   :  { %v82_v22 = vpop.xlane.xlu0 %81 }
  0xd7   :  { %v83_v23 = vrot.slane %v82_v22, 4 }
  0xd9   :  { %v84_v24 = vadd.f32 %v83_v23, %v82_v22 }
  0xda   :  { %v92_v26 = vpop.xlane.xlu0 %91 }
  0xdb   :  { %v85_v27 = vrot.slane %v84_v24, 2  ;;  %v93_v28 = vrot.slane %v92_v26, 4 }
  0xdd   :  { %v94_v29 = vadd.f32 %v93_v28, %v92_v26  ;;  %v86_v30 = vadd.f32 %v85_v27, %v84_v24 }
  0xdf   :  { %v95_v32 = vrot.slane %v94_v29, 2  ;;  %v87_v33 = vrot.slane %v86_v30, 1 }
  0xe1   :  { %v96_v34 = vadd.f32 %v95_v32, %v94_v29  ;;  %v88_v35 = vadd.f32 %v87_v33, %v86_v30 }
  0xe3   :  { %135 = vpush %v88_v35  ;;  %v97_v37 = vrot.slane %v96_v34, 1 }
  0xe5   :  { %v98_v38 = vadd.f32 %v97_v37, %v96_v34 }
  0xe7   :  { %137 = vpush %v98_v38 }
  0xe8   :  { %139 = vpush %v108_v39 }
 0x114   :  { %s136_s1 = spop %135 }
 0x115   :  { %s110_s9 = smul.f32 2.0, %s136_s1 }
 0x117   :  { %s111_s10 = sadd.f32 1e-09, %s110_s9 }
 0x118   :  { %s138_s6 = spop %137 }
 0x119   :  { %s140_s7 = spop %139 }
 0x11a   :  { %s112_s8 = sadd.f32 %s140_s7, %s138_s6 }
 0x11c   :  { %v113_v40 = vstv %s112_s8 }
 0x11d   :  { %156 = vrcp.f32 %v113_v40 }
 0x127   :  { %v157_v41 = vpop.eup %156 }
 0x128   :  { %141 = vpush %v157_v41 }
 0x159   :  { %s142_s11 = spop %141 }
 0x15a   :  { %s116_s12 = smul.f32 %s142_s11, %s111_s10 }
 0x15c   :  { %s117_s13 = ssub.f32 1.0, %s116_s12 }
 0x15e   :  { %119 = sst [smem:[#allocation10]] %s117_s13 }
 0x15f   :  { %211 = shalt.err (!%p208_p4)
}
 0x160   :  { %s222_s21 = smov [#allocation10]  }
 0x161   :  { %127 = dma.smem_to_hbm %s222_s21, 16, %s276_s2, [#allocation7]  }
 0x162   :  { %216 = dma.done.wait [#allocation7], 16  }
 0x163   :  { %217 = vsyncadd [#allocation7], 4294967280 }
 0x164   :  { %131 = sfence }
 0x165   :  { %132 = vsyncpa [#allocation6], 1 }
 0x166   :  { %133 = vsyncpa [#allocation9], 1 }
 0x167   :  { %134 = vsyncpa [#allocation7], 1 }

</bundles_post_ra>
